<compile_context>
chip_gen: v5e
topology: v5e:2x2
jax: 0.10.0
libtpu: 0.0.40
codegen_flags: <defaults>
</compile_context>

<pallas_src>
import jax
import jax.numpy as jnp
from jax.experimental import pallas as pl
from jax.experimental.pallas import tpu as pltpu


def _round_up(x, m):
    return ((x + m - 1) // m) * m


def _padded_tile_bytes(rows, cols, itemsize):
    # VMEM tiles pad the trailing two dims to (8, 128).
    return _round_up(rows, 8) * _round_up(cols, 128) * itemsize


def _adapter_kernel(frcn_ref, bbox_ref, w1_ref, wf_ref, bf_ref, img_ref, abs_ref):
    # frcn_ref: (TM, F) f32   bbox_ref: (TM, 5) f32
    # w1_ref:   (F, H)  bf16  wf_ref:   (5, H)  f32   bf_ref: (1, H) f32
    # img_ref:  (TM, H) out   abs_ref:  (TM, 1) f32  (per-row sum(|frcn|) for the mask)
    frcn = frcn_ref[...]                                            # (TM, F) f32

    # make_mask side output: exact f32 abs-sum of the original features.
    abs_ref[...] = jnp.sum(jnp.abs(frcn), axis=-1, keepdims=True)

    # frcn part of Linear(F+E -> H): bf16 MXU operands, f32 accumulation.
    acc = jnp.dot(frcn.astype(jnp.bfloat16), w1_ref[...],
                  preferred_element_type=jnp.float32)               # (TM, H) f32

    # Folded bbox path: bbox @ (w_bbox @ w_frcn2), unrolled as 5 broadcast FMAs
    # into the (TM, H) accumulator — f32 on the VPU, hidden under the frcn DMA/MXU.
    bbox = bbox_ref[...]                                            # (TM, 5) f32
    wf = wf_ref[...]                                                # (5, H)  f32
    for k in range(5):
        acc = acc + bbox[:, k:k + 1] * wf[k:k + 1, :]

    img_ref[...] = (acc + bf_ref[...]).astype(img_ref.dtype)


def _choose_tile_m(M, tile_m):
    TM = min(tile_m, _round_up(M, 16))
    n_steps = pl.cdiv(M, TM)
    # v7x megacore: prefer >= 2 grid steps so both TensorCores get work; also
    # rebalances a ragged last tile.
    if n_steps < 2 and M > 16:
        n_steps = 2
    TM = _round_up(pl.cdiv(M, n_steps), 16)
    n_steps = pl.cdiv(M, TM)
    return TM, n_steps


def base_adapter_forward(frcn_feat, grid_feat, bbox_feat, params, *,
                         tile_m=512, out_dtype=jnp.float32):
    """frcn_feat: [B, N, F], grid_feat unused (vqa dataset), bbox_feat: [B, N, 5]."""
    del grid_feat  # feat_filter('vqa', ...) drops grid_feat
    B, N, F = frcn_feat.shape
    H = params["w_frcn1"].shape[1]
    M = B * N

    # Fold the bbox path:  (bbox @ Wb + bb) @ W2 + bf == bbox @ (Wb @ W2) + (bb @ W2 + bf)
    # (w_frcn = concat([W1; W2], axis=0) in the original concat-linear formulation).
    w_fold = params["w_bbox"] @ params["w_frcn2"]                       # (5, H) f32
    b_fold = params["b_bbox"] @ params["w_frcn2"] + params["b_frcn"]    # (1, H) f32
    w1_bf = params["w_frcn1"].astype(jnp.bfloat16)                      # (F, H) bf16

    # Flatten B*N -> M; frcn stays f32 (single HBM pass; cast + mask happen in-kernel).
    frcn_2d = frcn_feat.reshape(M, F)
    bbox_2d = bbox_feat.reshape(M, 5)

    TM, n_steps = _choose_tile_m(M, tile_m)

    # Right-sized VMEM budget (tile-padded, with buffer counts) + generous margin.
    out_isz = jnp.dtype(out_dtype).itemsize
    vmem_need = (
        2 * _padded_tile_bytes(TM, F, 4)      # frcn, double-buffered
        + 2 * _padded_tile_bytes(TM, 5, 4)    # bbox, double-buffered
        + 1 * _padded_tile_bytes(F, H, 2)     # W1 bf16, single-buffered
        + 1 * _padded_tile_bytes(5, H, 4)     # W_fold
        + 1 * _padded_tile_bytes(1, H, 4)     # b_fold
        + 2 * _padded_tile_bytes(TM, H, out_isz)  # img out, double-buffered
        + 2 * _padded_tile_bytes(TM, 1, 4)    # abs-sum out
    )
    vmem_limit = min(max(2 * vmem_need, 16 << 20), 100 << 20)

    img2d, abssum = pl.pallas_call(
        _adapter_kernel,
        out_shape=(
            jax.ShapeDtypeStruct((M, H), out_dtype),
            jax.ShapeDtypeStruct((M, 1), jnp.float32),
        ),
        grid_spec=pltpu.PrefetchScalarGridSpec(
            num_scalar_prefetch=0,
            grid=(n_steps,),
            in_specs=[
                pl.BlockSpec((TM, F), lambda i: (i, 0)),                 # frcn (f32)
                pl.BlockSpec((TM, 5), lambda i: (i, 0)),                 # bbox (f32)
                pl.BlockSpec((F, H), lambda i: (0, 0),
                             pipeline_mode=pl.Buffered(1)),              # W1 (bf16), invariant
                pl.BlockSpec((5, H), lambda i: (0, 0),
                             pipeline_mode=pl.Buffered(1)),              # W_fold, invariant
                pl.BlockSpec((1, H), lambda i: (0, 0),
                             pipeline_mode=pl.Buffered(1)),              # b_fold, invariant
            ],
            out_specs=[
                pl.BlockSpec((TM, H), lambda i: (i, 0)),                 # img_feat
                pl.BlockSpec((TM, 1), lambda i: (i, 0)),                 # row abs-sum
            ],
        ),
        compiler_params=pltpu.CompilerParams(
            dimension_semantics=("parallel",),
            vmem_limit_bytes=int(vmem_limit),
        ),
    )(frcn_2d, bbox_2d, w1_bf, w_fold, b_fold)

    img_feat = img2d.reshape(B, N, H)
    img_feat_mask = (abssum.reshape(B, N) == 0)[:, None, None, :]
    return img_feat, img_feat_mask


def init_params(key, F, E, H):
    k = jax.random.split(key, 4)
    return {
        "w_bbox": jax.random.normal(k[0], (5, E), jnp.float32) * 0.1,
        "b_bbox": jnp.zeros((1, E), jnp.float32),
        "w_frcn1": jax.random.normal(k[1], (F, H), jnp.float32) * 0.05,
        "w_frcn2": jax.random.normal(k[2], (E, H), jnp.float32) * 0.05,
        "b_frcn": jax.random.normal(k[3], (1, H), jnp.float32) * 0.01,
    }


if __name__ == "__main__":
    B, N, F, E, H = 2, 8, 32, 16, 32
    key = jax.random.PRNGKey(0)
    kf, kb, kp = jax.random.split(key, 3)

    frcn_feat = jax.random.normal(kf, (B, N, F), jnp.float32)
    # zero out one object row to exercise the mask path
    frcn_feat = frcn_feat.at[1, 5].set(0.0)
    bbox_feat = jax.random.uniform(kb, (B, N, 5), jnp.float32)
    grid_feat = jnp.zeros((B, N, F), jnp.float32)  # unused for 'vqa' dataset

    params = init_params(kp, F, E, H)

    img_feat, img_feat_mask = base_adapter_forward(frcn_feat, grid_feat,
                                                   bbox_feat, params)
    jax.block_until_ready((img_feat, img_feat_mask))

    # Reference in plain JAX (frcn/W1 rounded to bf16 like the MXU operands; the
    # bbox path is pure f32 in both kernel and reference).
    frcn_bf = frcn_feat.astype(jnp.bfloat16).astype(jnp.float32)
    w1_bf = params["w_frcn1"].astype(jnp.bfloat16).astype(jnp.float32)
    ref_bbox = bbox_feat @ params["w_bbox"] + params["b_bbox"][0]
    ref_img = frcn_bf @ w1_bf + ref_bbox @ params["w_frcn2"] + params["b_frcn"][0]
    ref_mask = (jnp.sum(jnp.abs(frcn_feat), axis=-1) == 0)[:, None, None, :]

    assert img_feat.shape == (B, N, H)
    assert img_feat_mask.shape == (B, 1, 1, N)
    assert jnp.allclose(img_feat, ref_img, atol=1e-2, rtol=1e-2)
    assert bool(jnp.all(img_feat_mask == ref_mask))

    print("KERNEL_OK")
</pallas_src>

<mosaic_0001>
module attributes {stable_mosaic.version = 11 : i64} {
  func.func @_adapter_kernel(%arg0: i32, %arg1: memref<16x32xf32, #tpu.memory_space<vmem>>, %arg2: memref<16x5xf32, #tpu.memory_space<vmem>>, %arg3: memref<32x32xbf16, #tpu.memory_space<vmem>>, %arg4: memref<5x32xf32, #tpu.memory_space<vmem>>, %arg5: memref<1x32xf32, #tpu.memory_space<vmem>>, %arg6: memref<16x32xf32, #tpu.memory_space<vmem>>, %arg7: memref<16x1xf32, #tpu.memory_space<vmem>>) attributes {dimension_semantics = [#tpu.dimension_semantics<parallel>], iteration_bounds = array<i64: 1>, scalar_prefetch = 0 : i64, scratch_operands = 0 : i64, tpu.core_type = #tpu.core_type<tc>, window_params = [{transform_indices = @transform_0, window_bounds = array<i64: 16, 32>}, {transform_indices = @transform_1, window_bounds = array<i64: 16, 5>}, {pipeline_mode = #tpu.pipeline_mode<synchronous>, transform_indices = @transform_2, window_bounds = array<i64: 32, 32>}, {pipeline_mode = #tpu.pipeline_mode<synchronous>, transform_indices = @transform_3, window_bounds = array<i64: 5, 32>}, {pipeline_mode = #tpu.pipeline_mode<synchronous>, transform_indices = @transform_4, window_bounds = array<i64: 1, 32>}, {transform_indices = @transform_5, window_bounds = array<i64: 16, 32>}, {transform_indices = @transform_6, window_bounds = array<i64: 16, 1>}]} {
    %c0 = arith.constant 0 : index
    %c0_0 = arith.constant 0 : index
    %0 = vector.load %arg1[%c0, %c0_0] : memref<16x32xf32, #tpu.memory_space<vmem>>, vector<16x32xf32>
    %1 = math.absf %0 : vector<16x32xf32>
    %cst = arith.constant dense<0.000000e+00> : vector<16xf32>
    %2 = vector.multi_reduction <add>, %1, %cst [1] : vector<16x32xf32> to vector<16xf32>
    %3 = vector.shape_cast %2 : vector<16xf32> to vector<16x1xf32>
    %c0_1 = arith.constant 0 : index
    %c0_2 = arith.constant 0 : index
    %4 = vector.load %arg7[%c0_1, %c0_2] : memref<16x1xf32, #tpu.memory_space<vmem>>, vector<16x1xf32>
    tpu.vector_store %arg7[%c0_1, %c0_2], %3 {strides = array<i32>} : memref<16x1xf32, #tpu.memory_space<vmem>>, vector<16x1xf32>,
    %5 = arith.truncf %0 : vector<16x32xf32> to vector<16x32xbf16>
    %c0_3 = arith.constant 0 : index
    %c0_4 = arith.constant 0 : index
    %6 = vector.load %arg3[%c0_3, %c0_4] : memref<32x32xbf16, #tpu.memory_space<vmem>>, vector<32x32xbf16>
    %cst_5 = arith.constant dense<0.000000e+00> : vector<16x32xf32>
    %7 = tpu.matmul %5, %6, %cst_5 {dimension_numbers = #tpu.dot_dimension_numbers<[1], [0], [0], [1], [0, 0, 1, 1], [], []>} : vector<16x32xbf16>, vector<32x32xbf16>, vector<16x32xf32> -> vector<16x32xf32>
    %c0_6 = arith.constant 0 : index
    %c0_7 = arith.constant 0 : index
    %8 = vector.load %arg2[%c0_6, %c0_7] : memref<16x5xf32, #tpu.memory_space<vmem>>, vector<16x5xf32>
    %c0_8 = arith.constant 0 : index
    %c0_9 = arith.constant 0 : index
    %9 = vector.load %arg4[%c0_8, %c0_9] : memref<5x32xf32, #tpu.memory_space<vmem>>, vector<5x32xf32>
    %10 = vector.extract_strided_slice %8 {offsets = [0, 0], sizes = [16, 1], strides = [1, 1]} : vector<16x5xf32> to vector<16x1xf32>
    %11 = vector.extract_strided_slice %9 {offsets = [0, 0], sizes = [1, 32], strides = [1, 1]} : vector<5x32xf32> to vector<1x32xf32>
    %12 = vector.broadcast %10 : vector<16x1xf32> to vector<16x32xf32>
    %13 = vector.broadcast %11 : vector<1x32xf32> to vector<16x32xf32>
    %14 = arith.mulf %12, %13 : vector<16x32xf32>
    %15 = arith.addf %7, %14 : vector<16x32xf32>
    %16 = vector.extract_strided_slice %8 {offsets = [0, 1], sizes = [16, 1], strides = [1, 1]} : vector<16x5xf32> to vector<16x1xf32>
    %17 = vector.extract_strided_slice %9 {offsets = [1, 0], sizes = [1, 32], strides = [1, 1]} : vector<5x32xf32> to vector<1x32xf32>
    %18 = vector.broadcast %16 : vector<16x1xf32> to vector<16x32xf32>
    %19 = vector.broadcast %17 : vector<1x32xf32> to vector<16x32xf32>
    %20 = arith.mulf %18, %19 : vector<16x32xf32>
    %21 = arith.addf %15, %20 : vector<16x32xf32>
    %22 = vector.extract_strided_slice %8 {offsets = [0, 2], sizes = [16, 1], strides = [1, 1]} : vector<16x5xf32> to vector<16x1xf32>
    %23 = vector.extract_strided_slice %9 {offsets = [2, 0], sizes = [1, 32], strides = [1, 1]} : vector<5x32xf32> to vector<1x32xf32>
    %24 = vector.broadcast %22 : vector<16x1xf32> to vector<16x32xf32>
    %25 = vector.broadcast %23 : vector<1x32xf32> to vector<16x32xf32>
    %26 = arith.mulf %24, %25 : vector<16x32xf32>
    %27 = arith.addf %21, %26 : vector<16x32xf32>
    %28 = vector.extract_strided_slice %8 {offsets = [0, 3], sizes = [16, 1], strides = [1, 1]} : vector<16x5xf32> to vector<16x1xf32>
    %29 = vector.extract_strided_slice %9 {offsets = [3, 0], sizes = [1, 32], strides = [1, 1]} : vector<5x32xf32> to vector<1x32xf32>
    %30 = vector.broadcast %28 : vector<16x1xf32> to vector<16x32xf32>
    %31 = vector.broadcast %29 : vector<1x32xf32> to vector<16x32xf32>
    %32 = arith.mulf %30, %31 : vector<16x32xf32>
    %33 = arith.addf %27, %32 : vector<16x32xf32>
    %34 = vector.extract_strided_slice %8 {offsets = [0, 4], sizes = [16, 1], strides = [1, 1]} : vector<16x5xf32> to vector<16x1xf32>
    %35 = vector.extract_strided_slice %9 {offsets = [4, 0], sizes = [1, 32], strides = [1, 1]} : vector<5x32xf32> to vector<1x32xf32>
    %36 = vector.broadcast %34 : vector<16x1xf32> to vector<16x32xf32>
    %37 = vector.broadcast %35 : vector<1x32xf32> to vector<16x32xf32>
    %38 = arith.mulf %36, %37 : vector<16x32xf32>
    %39 = arith.addf %33, %38 : vector<16x32xf32>
    %c0_10 = arith.constant 0 : index
    %c0_11 = arith.constant 0 : index
    %40 = vector.load %arg5[%c0_10, %c0_11] : memref<1x32xf32, #tpu.memory_space<vmem>>, vector<1x32xf32>
    %41 = vector.broadcast %40 : vector<1x32xf32> to vector<16x32xf32>
    %42 = arith.addf %39, %41 : vector<16x32xf32>
    %c0_12 = arith.constant 0 : index
    %c0_13 = arith.constant 0 : index
    %43 = vector.load %arg6[%c0_12, %c0_13] : memref<16x32xf32, #tpu.memory_space<vmem>>, vector<16x32xf32>
    tpu.vector_store %arg6[%c0_12, %c0_13], %42 {strides = array<i32>} : memref<16x32xf32, #tpu.memory_space<vmem>>, vector<16x32xf32>,
    return
  }
  func.func @transform_0(%arg0: i32) -> (i32, i32) {
    %c0_i32 = arith.constant 0 : i32
    %c0_i32_0 = arith.constant 0 : i32
    return %arg0, %c0_i32 : i32, i32
  }
  func.func @transform_1(%arg0: i32) -> (i32, i32) {
    %c0_i32 = arith.constant 0 : i32
    %c0_i32_0 = arith.constant 0 : i32
    return %arg0, %c0_i32 : i32, i32
  }
  func.func @transform_2(%arg0: i32) -> (i32, i32) {
    %c0_i32 = arith.constant 0 : i32
    %c0_i32_0 = arith.constant 0 : i32
    %c0_i32_1 = arith.constant 0 : i32
    return %c0_i32, %c0_i32_0 : i32, i32
  }
  func.func @transform_3(%arg0: i32) -> (i32, i32) {
    %c0_i32 = arith.constant 0 : i32
    %c0_i32_0 = arith.constant 0 : i32
    %c0_i32_1 = arith.constant 0 : i32
    return %c0_i32, %c0_i32_0 : i32, i32
  }
  func.func @transform_4(%arg0: i32) -> (i32, i32) {
    %c0_i32 = arith.constant 0 : i32
    %c0_i32_0 = arith.constant 0 : i32
    %c0_i32_1 = arith.constant 0 : i32
    return %c0_i32, %c0_i32_0 : i32, i32
  }
  func.func @transform_5(%arg0: i32) -> (i32, i32) {
    %c0_i32 = arith.constant 0 : i32
    %c0_i32_0 = arith.constant 0 : i32
    return %arg0, %c0_i32 : i32, i32
  }
  func.func @transform_6(%arg0: i32) -> (i32, i32) {
    %c0_i32 = arith.constant 0 : i32
    %c0_i32_0 = arith.constant 0 : i32
    return %arg0, %c0_i32 : i32, i32
  }
}

</mosaic_0001>

<bundles_post_ra>
// kernel: tpu_custom_call.1
= control target key start
LH: loop header
LB: loop body
LE: loop exit
PB: predicated region body
PF: predicated region fallthrough
CT: control target
= control target key end

     0   :  { %12 = vsyncpa [#allocation3], 0  ;;  %s352_s0 = inlined_call_operand.vmem [shape: f32[16,32], index: 0, kind: input, shape index: {}]   ;;  %s353_s1 = inlined_call_operand.vmem [shape: f32[16,5], index: 1, kind: input, shape index: {}]   ;;  %s354_s2 = inlined_call_operand.hbm [shape: bf16[32,32], index: 2, kind: input, shape index: {}]   ;;  %s355_s3 = inlined_call_operand.vmem [shape: f32[5,32], index: 3, kind: input, shape index: {}]   ;;  %s356_s4 = inlined_call_operand.vmem [shape: f32[1,32], index: 4, kind: input, shape index: {}]   ;;  %s357_s5 = inlined_call_operand.hbm [shape: f32[16,32], index: 5, kind: output, shape index: {0}]   ;;  %s358_s6 = inlined_call_operand.vmem [shape: f32[16,1], index: 6, kind: output, shape index: {1}]  }
   0x1   :  { %13 = vsyncpa [#allocation4], 0  ;;  %s22_s23 = sshll.u32 %s354_s2, 4  ;;  %s271_s24 = smov [#allocation2]   ;;  %s23_s23 = int_to_ptr.hbm [resolvable:$true] %s22_s23 }
   0x2   :  { %s24_s25 = sshll.u32 %s271_s24, 4  ;;  %s272_s26 = smov 64   ;;  %s25_s25 = int_to_ptr.vmem [resolvable:$true] %s24_s25 }
   0x3   :  { %s273_s27 = smov 4  }
   0x4   :  { %30 = dma.hbm_to_vmem [thread:$0]  %s23_s23, 256, %s25_s25, [#allocation3], %s272_s26, %s272_s26, %s273_s27  }
   0x5   :  { %267 = dma.done.wait [#allocation3], 256  }
   0x6   :  { %268 = vsyncadd [#allocation3], 4294967040  ;;  %v274_v0 = vmov 0   ;;  %v275_v1 = vmov 1   ;;  %v276_v2 = vmov 2   ;;  %v59_v3 = vld [vmem:[%s353_s1] sm:$0xff] }
   0x7   :  { %209 = vset.pattern.permute.xlu1 %v274_v0  ;;  %210 = vset.pattern.permute.xlu2 %v275_v1  ;;  %v197_v4 = vld [vmem:[#allocation2 + $0x8] sm:$0xff]  ;;  %v40_v5 = vld [vmem:[%s352_s0] sm:$0xff]  ;;  %vm44_vm0 = vcmask 261120   ;;  %v277_v14 = vmov 3   ;;  %v278_v15 = vmov 4   ;;  %vm51_vm1 = vcmask 7168  }
   0x8   :  { %211 = vset.pattern.permute.xlu0 %v276_v2  ;;  %64 = vperm.xlu1 %209, %v59_v3   ;;  %v42_v6 = vand.u32 2147483647, %v40_v5  ;;  %v41_v7 = vld [vmem:[%s352_s0 + $0x8] sm:$0xff]  ;;  %v196_v8 = vld [vmem:[#allocation2] sm:$0xff]  ;;  %s279_s15 = smov [#allocation5]   ;;  %s170_s19 = sshll.u32 %s357_s5, 4  ;;  %s171_s19 = int_to_ptr.hbm [resolvable:$true] %s170_s19 }
   0x9   :  { %105 = vperm.xlu2 %210, %v59_v3   ;;  %96 = vmatpush.bf16.msra.mxu0 %v197_v4  ;;  %v54_v10 = vpack.c.bf16 %v41_v7, %v40_v5  ;;  %v43_v11 = vand.u32 2147483647, %v41_v7  ;;  %v60_v12 = vld [vmem:[%s353_s1 + $0x8] sm:$0xff]  ;;  %v61_v23 = vld [vmem:[%s355_s3] sm:$0x1f]  ;;  %s168_s16 = sshll.u32 %s279_s15, 4  ;;  %s169_s16 = int_to_ptr.vmem [resolvable:$true] %s168_s16 }
   0xa   :  { %v45_v9 = vsel %vm44_vm0, %v42_v6, 0.0  ;;  %v72_v26 = vperm.slane %v61_v23, 0  ;;  %v112_v27 = vperm.slane %v61_v23, 1  ;;  %v125_v30 = vperm.slane %v61_v23, 2  ;;  %v218_v51 = vld [vmem:[%s356_s4] ss:$0 sm:$0xff] }
   0xb   :  { %46 = vadd.xlane.f32.xlu0 %v45_v9  ;;  %v48_v13 = vsel %vm44_vm0, %v43_v11, 0.0  ;;  %v138_v38 = vperm.slane %v61_v23, 3  ;;  %v151_v40 = vperm.slane %v61_v23, 4  ;;  %s280_s4 = smov 128   ;;  %s281_s20 = smov 8  }
   0xd   :  { %97 = vmatpush.bf16.msra.mxu0 %v196_v8 }
  0x10   :  { %69 = vperm.xlu1 %209, %v60_v12   ;;  %195 = vmatmul.msk.bf16.vlgmr.msra.gmra.mxu0 %vm44_vm0, %v54_v10 }
  0x11   :  { %109 = vperm.xlu2 %210, %v60_v12  }
  0x13   :  { %49 = vadd.xlane.f32.xlu0 %v48_v13 }
  0x18   :  { %212 = vset.pattern.permute.xlu1 %v276_v2 }
  0x19   :  { %122 = vperm.xlu1 %212, %v60_v12   ;;  %213 = vset.pattern.permute.xlu2 %v277_v14 }
  0x1a   :  { %131 = vperm.xlu2 %213, %v59_v3  }
  0x21   :  { %214 = vset.pattern.permute.xlu1 %v277_v14 }
  0x22   :  { %135 = vperm.xlu1 %214, %v60_v12   ;;  %215 = vset.pattern.permute.xlu2 %v278_v15 }
  0x23   :  { %144 = vperm.xlu2 %215, %v59_v3  }
  0x27   :  { %118 = vperm.xlu0 %211, %v59_v3  }
  0x2a   :  { %216 = vset.pattern.permute.xlu1 %v278_v15 }
  0x2b   :  { %148 = vperm.xlu1 %216, %v60_v12  }
  0x2f   :  { %217 = vset.pattern.permute.xlu0 %v278_v15 }
  0x63   :  { %v106_v17 = vpop.permute.xlu2 %105 }
  0x64   :  { %v113_v36 = vmul.f32 %v112_v27, %v106_v17 }
  0x6b   :  { %v110_v21 = vpop.permute.xlu2 %109 }
  0x6c   :  { %v114_v33 = vmul.f32 %v112_v27, %v110_v21 }
  0x74   :  { %v132_v25 = vpop.permute.xlu2 %131 }
  0x75   :  { %v139_v46 = vmul.f32 %v138_v38, %v132_v25 }
  0x7a   :  { %v65_v16 = vpop.permute.xlu1 %64 }
  0x7b   :  { %v73_v28 = vmul.f32 %v72_v26, %v65_v16 }
  0x7d   :  { %v145_v42 = vpop.permute.xlu2 %144 }
  0x7e   :  { %v47_v18 = vpop.xlane.xlu0 %46  ;;  %v152_v49 = vmul.f32 %v151_v40, %v145_v42 }
  0x7f   :  { %52 = vst.msk [vmem:[%s358_s6] sm:$0xff] %vm51_vm1, %v47_v18 }
  0x82   :  { %v70_v19 = vpop.permute.xlu1 %69 }
  0x83   :  { %v74_v29 = vmul.f32 %v72_v26, %v70_v19 }
  0x86   :  { %v50_v20 = vpop.xlane.xlu0 %49 }
  0x87   :  { %53 = vst.msk [vmem:[%s358_s6 + $0x8] sm:$0xff] %vm51_vm1, %v50_v20 }
  0x8b   :  { %v123_v22 = vpop.permute.xlu1 %122 }
  0x8c   :  { %v127_v37 = vmul.f32 %v125_v30, %v123_v22 }
  0x8d   :  { %v99_v24 = vpop.f32.mrf.mxu0 }
  0x8e   :  { %v100_v34 = vadd.f32 %v99_v24, %v73_v28 }
  0x90   :  { %v115_v43 = vadd.f32 %v113_v36, %v100_v34 }
  0x94   :  { %v136_v31 = vpop.permute.xlu1 %135 }
  0x95   :  { %v101_v32 = vpop.f32.mrf.mxu0  ;;  %v140_v47 = vmul.f32 %v138_v38, %v136_v31 }
  0x96   :  { %v102_v35 = vadd.f32 %v101_v32, %v74_v29 }
  0x98   :  { %v116_v39 = vadd.f32 %v114_v33, %v102_v35 }
  0x99   :  { %v119_v41 = vpop.permute.xlu0 %118 }
  0x9a   :  { %v129_v44 = vadd.f32 %v127_v37, %v116_v39  ;;  %v126_v45 = vmul.f32 %v125_v30, %v119_v41 }
  0x9c   :  { %v128_v48 = vadd.f32 %v126_v45, %v115_v43  ;;  %v142_v53 = vadd.f32 %v140_v47, %v129_v44 }
  0x9d   :  { %v149_v50 = vpop.permute.xlu1 %148 }
  0x9e   :  { %v141_v52 = vadd.f32 %v139_v46, %v128_v48  ;;  %v153_v54 = vmul.f32 %v151_v40, %v149_v50 }
  0xa0   :  { %v154_v55 = vadd.f32 %v152_v49, %v141_v52  ;;  %v155_v56 = vadd.f32 %v153_v54, %v142_v53 }
  0xa2   :  { %v160_v57 = vadd.f32 %v218_v51, %v154_v55  ;;  %v161_v58 = vadd.f32 %v218_v51, %v155_v56 }
  0xa4   :  { %162 = vst.msk [vmem:[#allocation5] sm:$0xff] %vm44_vm0, %v160_v57 }
  0xa5   :  { %163 = vst.msk [vmem:[#allocation5 + $0x8] sm:$0xff] %vm44_vm0, %v161_v58 }
  0xa6   :  { %176 = dma.vmem_to_hbm [thread:$0]  %s169_s16, 256, %s171_s19, [#allocation4], %s280_s4, %s280_s4, %s281_s20  }
  0xa7   :  { %269 = dma.done.wait [#allocation4], 256  }
  0xa8   :  { %270 = vsyncadd [#allocation4], 4294967040 }
  0xa9   :  { %185 = vsyncpa [#allocation3], 1 }
  0xaa   :  { %186 = vsyncpa [#allocation4], 1 }

</bundles_post_ra>
